<compile_context>
chip_gen: v7x
topology: tpu7x:2x2x1
jax: 0.10.0
libtpu: 0.0.40
codegen_flags: <defaults>
</compile_context>

<pallas_src>
import functools

import jax
import jax.numpy as jnp
from jax import lax
from jax.experimental import pallas as pl
from jax.experimental.pallas import tpu as pltpu


# ----------------------------------------------------------------------------
# Fused kernel: one batch element per grid step.
#   x:(T,C)  w_qkv:(C,3H)  wp_t:(H,C)  bp:(1,C)  ->  y:(T,C), attn:(n_head,T,T)
# ----------------------------------------------------------------------------
def _mha_kernel(x_ref, wqkv_ref, wp_ref, bp_ref, *out_refs,
                n_head, head_size, is_decoder, with_attn):
    y_ref = out_refs[0]
    attn_ref = out_refs[1] if with_attn else None

    T = x_ref.shape[1]
    H = n_head * head_size
    scale = head_size ** -0.5

    x = x_ref[0]                                               # (T, C)

    # Fused QKV projection for every head: (T, C) @ (C, 3H) -> (T, 3H).
    qkv = jnp.dot(x, wqkv_ref[...], preferred_element_type=jnp.float32)
    q_all = qkv[:, 0 * H:1 * H]                                # (T, H) head0|head1|...
    k_all = qkv[:, 1 * H:2 * H]
    v_all = qkv[:, 2 * H:3 * H]

    if is_decoder:
        row = lax.broadcasted_iota(jnp.int32, (T, T), 0)
        col = lax.broadcasted_iota(jnp.int32, (T, T), 1)
        causal = row >= col                                    # lower-triangular

    acc = jnp.zeros((T, x_ref.shape[2]), jnp.float32)          # projection accumulator
    for h in range(n_head):
        lo, hi = h * head_size, (h + 1) * head_size
        q = q_all[:, lo:hi]                                    # (T, hs)
        k = k_all[:, lo:hi]
        v = v_all[:, lo:hi]

        # scores = q @ k^T * head_size**-0.5  (NT matmul, k never transposed)
        s = lax.dot_general(q, k, (((1,), (1,)), ((), ())),
                            preferred_element_type=jnp.float32) * scale
        if is_decoder:
            s = jnp.where(causal, s, -jnp.inf)                 # diagonal never masked

        # softmax over last axis (f32)
        s_max = jnp.max(s, axis=-1, keepdims=True)
        e = jnp.exp(s - s_max)
        w = e * pl.reciprocal(jnp.sum(e, axis=-1, keepdims=True), approx=False)

        # TODO(synk): nn.Dropout on attention weights is identity at inference; omitted.
        if with_attn:
            attn_ref[0, h] = w

        o_h = jnp.dot(w, v, preferred_element_type=jnp.float32)        # (T, hs)
        # Equivalent to concat(heads) @ Wp^T: accumulate o_h @ Wp^T[:, lo:hi]^T
        acc = acc + jnp.dot(o_h, wp_ref[lo:hi, :],
                            preferred_element_type=jnp.float32)

    y_ref[0] = acc + bp_ref[...]
    # TODO(synk): final nn.Dropout is identity at inference; omitted.


def multi_head_attention(x, wq, wk, wv, wp, bp, *, is_decoder=True, return_attn=True):
    """x: (B, T, C).  wq/wk/wv: (n_head, head_size, C) (PyTorch (out,in) layout).
    wp: (C, n_head*head_size).  bp: (C,).  Returns (y, attn_maps) like the module."""
    B, T, C = x.shape
    n_head, head_size, _ = wq.shape
    H = n_head * head_size

    # Pre-transpose / stack weights ONCE in the wrapper (no in-kernel transposes).
    #   w_qkv: (C, 3H), column blocks q|k|v, heads concatenated head0|head1|...
    w_qkv = jnp.concatenate(
        [wq.reshape(H, C), wk.reshape(H, C), wv.reshape(H, C)], axis=0).T
    wp_t = wp.T                                                # (H, C)
    bp2 = bp.reshape(1, C)

    kernel = functools.partial(_mha_kernel, n_head=n_head, head_size=head_size,
                               is_decoder=is_decoder, with_attn=return_attn)

    out_shape = [jax.ShapeDtypeStruct((B, T, C), jnp.float32)]
    out_specs = [pl.BlockSpec((1, T, C), lambda b: (b, 0, 0))]
    if return_attn:
        out_shape.append(jax.ShapeDtypeStruct((B, n_head, T, T), jnp.float32))
        out_specs.append(pl.BlockSpec((1, n_head, T, T), lambda b: (b, 0, 0, 0)))

    results = pl.pallas_call(
        kernel,
        out_shape=tuple(out_shape),
        grid=(B,),
        in_specs=[
            pl.BlockSpec((1, T, C), lambda b: (b, 0, 0)),      # x (per-batch tile)
            pl.BlockSpec((C, 3 * H), lambda b: (0, 0)),        # fused QKV weight
            pl.BlockSpec((H, C), lambda b: (0, 0)),            # proj weight (pre-T)
            pl.BlockSpec((1, C), lambda b: (0, 0)),            # proj bias
        ],
        out_specs=tuple(out_specs),
        compiler_params=pltpu.CompilerParams(
            dimension_semantics=("parallel",)),
    )(x, w_qkv, wp_t, bp2)

    if return_attn:
        y, attn = results
        attn_maps = [attn[:, h] for h in range(n_head)]        # list of (B, T, T)
        return y, attn_maps
    return results[0], None


# ----------------------------------------------------------------------------
# Pure-JAX reference mirroring the PyTorch forward (correctness check).
# ----------------------------------------------------------------------------
def _reference(x, wq, wk, wv, wp, bp, is_decoder=True):
    B, T, C = x.shape
    n_head, head_size, _ = wq.shape
    tril = jnp.tril(jnp.ones((T, T), jnp.float32))
    outs, maps = [], []
    for h in range(n_head):
        q = x @ wq[h].T
        k = x @ wk[h].T
        v = x @ wv[h].T
        s = (q @ jnp.swapaxes(k, -2, -1)) * (head_size ** -0.5)
        if is_decoder:
            s = jnp.where(tril == 0.0, -jnp.inf, s)
        w = jax.nn.softmax(s, axis=-1)
        outs.append(w @ v)
        maps.append(w)
    oc = jnp.concatenate(outs, axis=-1)
    return oc @ wp.T + bp, maps


if __name__ == "__main__":
    # Small config consistent with the module: n_embd=32, n_head=4, head_size=8,
    # block_size(=T)=8, batch=2.
    B, T, n_embd, n_head, head_size = 2, 8, 32, 4, 8

    key = jax.random.PRNGKey(0)
    kx, kq, kk, kv, kp, kb = jax.random.split(key, 6)
    x = jax.random.normal(kx, (B, T, n_embd), jnp.float32)
    wq = jax.random.normal(kq, (n_head, head_size, n_embd), jnp.float32) * 0.1
    wk = jax.random.normal(kk, (n_head, head_size, n_embd), jnp.float32) * 0.1
    wv = jax.random.normal(kv, (n_head, head_size, n_embd), jnp.float32) * 0.1
    wp = jax.random.normal(kp, (n_embd, n_head * head_size), jnp.float32) * 0.1
    bp = jax.random.normal(kb, (n_embd,), jnp.float32) * 0.1

    y, attn_maps = multi_head_attention(x, wq, wk, wv, wp, bp, is_decoder=True)
    y = jax.block_until_ready(y)
    attn_maps = [jax.block_until_ready(a) for a in attn_maps]

    y_ref, maps_ref = _reference(x, wq, wk, wv, wp, bp, is_decoder=True)
    assert jnp.allclose(y, y_ref, atol=1e-4, rtol=1e-4)
    for a, r in zip(attn_maps, maps_ref):
        assert a.shape == (B, T, T)
        assert jnp.allclose(a, r, atol=1e-5, rtol=1e-5)

    # Optional fast path without attention-map writeback (skips O(T^2) HBM out).
    y2, _ = multi_head_attention(x, wq, wk, wv, wp, bp,
                                 is_decoder=True, return_attn=False)
    y2 = jax.block_until_ready(y2)
    assert jnp.allclose(y2, y_ref, atol=1e-4, rtol=1e-4)

    print("KERNEL_OK")
</pallas_src>

<mosaic_0001>
module attributes {stable_mosaic.version = 11 : i64} {
  func.func @_mha_kernel(%arg0: i32, %arg1: memref<1x8x32xf32, #tpu.memory_space<vmem>>, %arg2: memref<32x96xf32, #tpu.memory_space<vmem>>, %arg3: memref<32x32xf32, #tpu.memory_space<vmem>>, %arg4: memref<1x32xf32, #tpu.memory_space<vmem>>, %arg5: memref<1x8x32xf32, #tpu.memory_space<vmem>>, %arg6: memref<1x4x8x8xf32, #tpu.memory_space<vmem>>) attributes {dimension_semantics = [#tpu.dimension_semantics<parallel>], iteration_bounds = array<i64: 2>, scalar_prefetch = 0 : i64, scratch_operands = 0 : i64, tpu.core_type = #tpu.core_type<tc>, window_params = [{transform_indices = @transform_0, window_bounds = array<i64: 1, 8, 32>}, {pipeline_mode = #tpu.pipeline_mode<synchronous>, transform_indices = @transform_1, window_bounds = array<i64: 32, 96>}, {pipeline_mode = #tpu.pipeline_mode<synchronous>, transform_indices = @transform_2, window_bounds = array<i64: 32, 32>}, {pipeline_mode = #tpu.pipeline_mode<synchronous>, transform_indices = @transform_3, window_bounds = array<i64: 1, 32>}, {transform_indices = @transform_4, window_bounds = array<i64: 1, 8, 32>}, {transform_indices = @transform_5, window_bounds = array<i64: 1, 4, 8, 8>}]} {
    %c0 = arith.constant 0 : index
    %c0_0 = arith.constant 0 : index
    %c0_1 = arith.constant 0 : index
    %0 = vector.load %arg1[%c0, %c0_0, %c0_1] : memref<1x8x32xf32, #tpu.memory_space<vmem>>, vector<1x8x32xf32>
    %1 = vector.shape_cast %0 : vector<1x8x32xf32> to vector<8x32xf32>
    %c0_2 = arith.constant 0 : index
    %c0_3 = arith.constant 0 : index
    %2 = vector.load %arg2[%c0_2, %c0_3] : memref<32x96xf32, #tpu.memory_space<vmem>>, vector<32x96xf32>
    %cst = arith.constant dense<0.000000e+00> : vector<8x96xf32>
    %3 = tpu.matmul %1, %2, %cst {dimension_numbers = #tpu.dot_dimension_numbers<[1], [0], [0], [1], [0, 0, 1, 1], [], []>} : vector<8x32xf32>, vector<32x96xf32>, vector<8x96xf32> -> vector<8x96xf32>
    %4 = vector.extract_strided_slice %3 {offsets = [0, 0], sizes = [8, 32], strides = [1, 1]} : vector<8x96xf32> to vector<8x32xf32>
    %5 = vector.extract_strided_slice %3 {offsets = [0, 32], sizes = [8, 32], strides = [1, 1]} : vector<8x96xf32> to vector<8x32xf32>
    %6 = vector.extract_strided_slice %3 {offsets = [0, 64], sizes = [8, 32], strides = [1, 1]} : vector<8x96xf32> to vector<8x32xf32>
    %7 = tpu.iota {dimensions = array<i32: 0>} : vector<8x8xi32>
    %8 = tpu.iota {dimensions = array<i32: 1>} : vector<8x8xi32>
    %9 = arith.cmpi sge, %7, %8 : vector<8x8xi32>
    %cst_4 = arith.constant 0.000000e+00 : f32
    %10 = vector.broadcast %cst_4 : f32 to vector<8x32xf32>
    %11 = vector.extract_strided_slice %4 {offsets = [0, 0], sizes = [8, 8], strides = [1, 1]} : vector<8x32xf32> to vector<8x8xf32>
    %12 = vector.extract_strided_slice %5 {offsets = [0, 0], sizes = [8, 8], strides = [1, 1]} : vector<8x32xf32> to vector<8x8xf32>
    %13 = vector.extract_strided_slice %6 {offsets = [0, 0], sizes = [8, 8], strides = [1, 1]} : vector<8x32xf32> to vector<8x8xf32>
    %cst_5 = arith.constant dense<0.000000e+00> : vector<8x8xf32>
    %14 = tpu.matmul %11, %12, %cst_5 {dimension_numbers = #tpu.dot_dimension_numbers<[1], [1], [0], [0], [0, 0, 1, 0], [], []>} : vector<8x8xf32>, vector<8x8xf32>, vector<8x8xf32> -> vector<8x8xf32>
    %cst_6 = arith.constant 0.353553385 : f32
    %15 = vector.broadcast %cst_6 : f32 to vector<8x8xf32>
    %16 = arith.mulf %14, %15 : vector<8x8xf32>
    %cst_7 = arith.constant 0xFF800000 : f32
    %17 = vector.broadcast %cst_7 : f32 to vector<8x8xf32>
    %18 = arith.select %9, %16, %17 : vector<8x8xi1>, vector<8x8xf32>
    %cst_8 = arith.constant dense<0xFF800000> : vector<8xf32>
    %19 = vector.multi_reduction <maximumf>, %18, %cst_8 [1] : vector<8x8xf32> to vector<8xf32>
    %20 = vector.shape_cast %19 : vector<8xf32> to vector<8x1xf32>
    %21 = vector.broadcast %20 : vector<8x1xf32> to vector<8x8xf32>
    %22 = arith.subf %18, %21 : vector<8x8xf32>
    %23 = math.exp %22 : vector<8x8xf32>
    %cst_9 = arith.constant dense<0.000000e+00> : vector<8xf32>
    %24 = vector.multi_reduction <add>, %23, %cst_9 [1] : vector<8x8xf32> to vector<8xf32>
    %25 = vector.shape_cast %24 : vector<8xf32> to vector<8x1xf32>
    %26 = tpu.reciprocal %25 : vector<8x1xf32> -> vector<8x1xf32>
    %27 = vector.broadcast %26 : vector<8x1xf32> to vector<8x8xf32>
    %28 = arith.mulf %23, %27 : vector<8x8xf32>
    %c0_10 = arith.constant 0 : index
    %c0_11 = arith.constant 0 : index
    %c0_12 = arith.constant 0 : index
    %c0_13 = arith.constant 0 : index
    %29 = vector.load %arg6[%c0_10, %c0_11, %c0_12, %c0_13] : memref<1x4x8x8xf32, #tpu.memory_space<vmem>>, vector<1x1x8x8xf32>
    %30 = vector.shape_cast %29 : vector<1x1x8x8xf32> to vector<8x8xf32>
    %31 = vector.shape_cast %28 : vector<8x8xf32> to vector<1x1x8x8xf32>
    tpu.vector_store %arg6[%c0_10, %c0_11, %c0_12, %c0_13], %31 {strides = array<i32>} : memref<1x4x8x8xf32, #tpu.memory_space<vmem>>, vector<1x1x8x8xf32>,
    %cst_14 = arith.constant dense<0.000000e+00> : vector<8x8xf32>
    %32 = tpu.matmul %28, %13, %cst_14 {dimension_numbers = #tpu.dot_dimension_numbers<[1], [0], [0], [1], [0, 0, 1, 1], [], []>} : vector<8x8xf32>, vector<8x8xf32>, vector<8x8xf32> -> vector<8x8xf32>
    %c0_15 = arith.constant 0 : index
    %c0_16 = arith.constant 0 : index
    %33 = vector.load %arg3[%c0_15, %c0_16] : memref<32x32xf32, #tpu.memory_space<vmem>>, vector<8x32xf32>
    %cst_17 = arith.constant dense<0.000000e+00> : vector<8x32xf32>
    %34 = tpu.matmul %32, %33, %cst_17 {dimension_numbers = #tpu.dot_dimension_numbers<[1], [0], [0], [1], [0, 0, 1, 1], [], []>} : vector<8x8xf32>, vector<8x32xf32>, vector<8x32xf32> -> vector<8x32xf32>
    %35 = arith.addf %10, %34 : vector<8x32xf32>
    %36 = vector.extract_strided_slice %4 {offsets = [0, 8], sizes = [8, 8], strides = [1, 1]} : vector<8x32xf32> to vector<8x8xf32>
    %37 = vector.extract_strided_slice %5 {offsets = [0, 8], sizes = [8, 8], strides = [1, 1]} : vector<8x32xf32> to vector<8x8xf32>
    %38 = vector.extract_strided_slice %6 {offsets = [0, 8], sizes = [8, 8], strides = [1, 1]} : vector<8x32xf32> to vector<8x8xf32>
    %cst_18 = arith.constant dense<0.000000e+00> : vector<8x8xf32>
    %39 = tpu.matmul %36, %37, %cst_18 {dimension_numbers = #tpu.dot_dimension_numbers<[1], [1], [0], [0], [0, 0, 1, 0], [], []>} : vector<8x8xf32>, vector<8x8xf32>, vector<8x8xf32> -> vector<8x8xf32>
    %cst_19 = arith.constant 0.353553385 : f32
    %40 = vector.broadcast %cst_19 : f32 to vector<8x8xf32>
    %41 = arith.mulf %39, %40 : vector<8x8xf32>
    %cst_20 = arith.constant 0xFF800000 : f32
    %42 = vector.broadcast %cst_20 : f32 to vector<8x8xf32>
    %43 = arith.select %9, %41, %42 : vector<8x8xi1>, vector<8x8xf32>
    %cst_21 = arith.constant dense<0xFF800000> : vector<8xf32>
    %44 = vector.multi_reduction <maximumf>, %43, %cst_21 [1] : vector<8x8xf32> to vector<8xf32>
    %45 = vector.shape_cast %44 : vector<8xf32> to vector<8x1xf32>
    %46 = vector.broadcast %45 : vector<8x1xf32> to vector<8x8xf32>
    %47 = arith.subf %43, %46 : vector<8x8xf32>
    %48 = math.exp %47 : vector<8x8xf32>
    %cst_22 = arith.constant dense<0.000000e+00> : vector<8xf32>
    %49 = vector.multi_reduction <add>, %48, %cst_22 [1] : vector<8x8xf32> to vector<8xf32>
    %50 = vector.shape_cast %49 : vector<8xf32> to vector<8x1xf32>
    %51 = tpu.reciprocal %50 : vector<8x1xf32> -> vector<8x1xf32>
    %52 = vector.broadcast %51 : vector<8x1xf32> to vector<8x8xf32>
    %53 = arith.mulf %48, %52 : vector<8x8xf32>
    %c0_23 = arith.constant 0 : index
    %c1 = arith.constant 1 : index
    %c0_24 = arith.constant 0 : index
    %c0_25 = arith.constant 0 : index
    %54 = vector.load %arg6[%c0_23, %c1, %c0_24, %c0_25] : memref<1x4x8x8xf32, #tpu.memory_space<vmem>>, vector<1x1x8x8xf32>
    %55 = vector.shape_cast %54 : vector<1x1x8x8xf32> to vector<8x8xf32>
    %56 = vector.shape_cast %53 : vector<8x8xf32> to vector<1x1x8x8xf32>
    tpu.vector_store %arg6[%c0_23, %c1, %c0_24, %c0_25], %56 {strides = array<i32>} : memref<1x4x8x8xf32, #tpu.memory_space<vmem>>, vector<1x1x8x8xf32>,
    %cst_26 = arith.constant dense<0.000000e+00> : vector<8x8xf32>
    %57 = tpu.matmul %53, %38, %cst_26 {dimension_numbers = #tpu.dot_dimension_numbers<[1], [0], [0], [1], [0, 0, 1, 1], [], []>} : vector<8x8xf32>, vector<8x8xf32>, vector<8x8xf32> -> vector<8x8xf32>
    %c8 = arith.constant 8 : index
    %c0_27 = arith.constant 0 : index
    %58 = vector.load %arg3[%c8, %c0_27] : memref<32x32xf32, #tpu.memory_space<vmem>>, vector<8x32xf32>
    %cst_28 = arith.constant dense<0.000000e+00> : vector<8x32xf32>
    %59 = tpu.matmul %57, %58, %cst_28 {dimension_numbers = #tpu.dot_dimension_numbers<[1], [0], [0], [1], [0, 0, 1, 1], [], []>} : vector<8x8xf32>, vector<8x32xf32>, vector<8x32xf32> -> vector<8x32xf32>
    %60 = arith.addf %35, %59 : vector<8x32xf32>
    %61 = vector.extract_strided_slice %4 {offsets = [0, 16], sizes = [8, 8], strides = [1, 1]} : vector<8x32xf32> to vector<8x8xf32>
    %62 = vector.extract_strided_slice %5 {offsets = [0, 16], sizes = [8, 8], strides = [1, 1]} : vector<8x32xf32> to vector<8x8xf32>
    %63 = vector.extract_strided_slice %6 {offsets = [0, 16], sizes = [8, 8], strides = [1, 1]} : vector<8x32xf32> to vector<8x8xf32>
    %cst_29 = arith.constant dense<0.000000e+00> : vector<8x8xf32>
    %64 = tpu.matmul %61, %62, %cst_29 {dimension_numbers = #tpu.dot_dimension_numbers<[1], [1], [0], [0], [0, 0, 1, 0], [], []>} : vector<8x8xf32>, vector<8x8xf32>, vector<8x8xf32> -> vector<8x8xf32>
    %cst_30 = arith.constant 0.353553385 : f32
    %65 = vector.broadcast %cst_30 : f32 to vector<8x8xf32>
    %66 = arith.mulf %64, %65 : vector<8x8xf32>
    %cst_31 = arith.constant 0xFF800000 : f32
    %67 = vector.broadcast %cst_31 : f32 to vector<8x8xf32>
    %68 = arith.select %9, %66, %67 : vector<8x8xi1>, vector<8x8xf32>
    %cst_32 = arith.constant dense<0xFF800000> : vector<8xf32>
    %69 = vector.multi_reduction <maximumf>, %68, %cst_32 [1] : vector<8x8xf32> to vector<8xf32>
    %70 = vector.shape_cast %69 : vector<8xf32> to vector<8x1xf32>
    %71 = vector.broadcast %70 : vector<8x1xf32> to vector<8x8xf32>
    %72 = arith.subf %68, %71 : vector<8x8xf32>
    %73 = math.exp %72 : vector<8x8xf32>
    %cst_33 = arith.constant dense<0.000000e+00> : vector<8xf32>
    %74 = vector.multi_reduction <add>, %73, %cst_33 [1] : vector<8x8xf32> to vector<8xf32>
    %75 = vector.shape_cast %74 : vector<8xf32> to vector<8x1xf32>
    %76 = tpu.reciprocal %75 : vector<8x1xf32> -> vector<8x1xf32>
    %77 = vector.broadcast %76 : vector<8x1xf32> to vector<8x8xf32>
    %78 = arith.mulf %73, %77 : vector<8x8xf32>
    %c0_34 = arith.constant 0 : index
    %c2 = arith.constant 2 : index
    %c0_35 = arith.constant 0 : index
    %c0_36 = arith.constant 0 : index
    %79 = vector.load %arg6[%c0_34, %c2, %c0_35, %c0_36] : memref<1x4x8x8xf32, #tpu.memory_space<vmem>>, vector<1x1x8x8xf32>
    %80 = vector.shape_cast %79 : vector<1x1x8x8xf32> to vector<8x8xf32>
    %81 = vector.shape_cast %78 : vector<8x8xf32> to vector<1x1x8x8xf32>
    tpu.vector_store %arg6[%c0_34, %c2, %c0_35, %c0_36], %81 {strides = array<i32>} : memref<1x4x8x8xf32, #tpu.memory_space<vmem>>, vector<1x1x8x8xf32>,
    %cst_37 = arith.constant dense<0.000000e+00> : vector<8x8xf32>
    %82 = tpu.matmul %78, %63, %cst_37 {dimension_numbers = #tpu.dot_dimension_numbers<[1], [0], [0], [1], [0, 0, 1, 1], [], []>} : vector<8x8xf32>, vector<8x8xf32>, vector<8x8xf32> -> vector<8x8xf32>
    %c16 = arith.constant 16 : index
    %c0_38 = arith.constant 0 : index
    %83 = vector.load %arg3[%c16, %c0_38] : memref<32x32xf32, #tpu.memory_space<vmem>>, vector<8x32xf32>
    %cst_39 = arith.constant dense<0.000000e+00> : vector<8x32xf32>
    %84 = tpu.matmul %82, %83, %cst_39 {dimension_numbers = #tpu.dot_dimension_numbers<[1], [0], [0], [1], [0, 0, 1, 1], [], []>} : vector<8x8xf32>, vector<8x32xf32>, vector<8x32xf32> -> vector<8x32xf32>
    %85 = arith.addf %60, %84 : vector<8x32xf32>
    %86 = vector.extract_strided_slice %4 {offsets = [0, 24], sizes = [8, 8], strides = [1, 1]} : vector<8x32xf32> to vector<8x8xf32>
    %87 = vector.extract_strided_slice %5 {offsets = [0, 24], sizes = [8, 8], strides = [1, 1]} : vector<8x32xf32> to vector<8x8xf32>
    %88 = vector.extract_strided_slice %6 {offsets = [0, 24], sizes = [8, 8], strides = [1, 1]} : vector<8x32xf32> to vector<8x8xf32>
    %cst_40 = arith.constant dense<0.000000e+00> : vector<8x8xf32>
    %89 = tpu.matmul %86, %87, %cst_40 {dimension_numbers = #tpu.dot_dimension_numbers<[1], [1], [0], [0], [0, 0, 1, 0], [], []>} : vector<8x8xf32>, vector<8x8xf32>, vector<8x8xf32> -> vector<8x8xf32>
    %cst_41 = arith.constant 0.353553385 : f32
    %90 = vector.broadcast %cst_41 : f32 to vector<8x8xf32>
    %91 = arith.mulf %89, %90 : vector<8x8xf32>
    %cst_42 = arith.constant 0xFF800000 : f32
    %92 = vector.broadcast %cst_42 : f32 to vector<8x8xf32>
    %93 = arith.select %9, %91, %92 : vector<8x8xi1>, vector<8x8xf32>
    %cst_43 = arith.constant dense<0xFF800000> : vector<8xf32>
    %94 = vector.multi_reduction <maximumf>, %93, %cst_43 [1] : vector<8x8xf32> to vector<8xf32>
    %95 = vector.shape_cast %94 : vector<8xf32> to vector<8x1xf32>
    %96 = vector.broadcast %95 : vector<8x1xf32> to vector<8x8xf32>
    %97 = arith.subf %93, %96 : vector<8x8xf32>
    %98 = math.exp %97 : vector<8x8xf32>
    %cst_44 = arith.constant dense<0.000000e+00> : vector<8xf32>
    %99 = vector.multi_reduction <add>, %98, %cst_44 [1] : vector<8x8xf32> to vector<8xf32>
    %100 = vector.shape_cast %99 : vector<8xf32> to vector<8x1xf32>
    %101 = tpu.reciprocal %100 : vector<8x1xf32> -> vector<8x1xf32>
    %102 = vector.broadcast %101 : vector<8x1xf32> to vector<8x8xf32>
    %103 = arith.mulf %98, %102 : vector<8x8xf32>
    %c0_45 = arith.constant 0 : index
    %c3 = arith.constant 3 : index
    %c0_46 = arith.constant 0 : index
    %c0_47 = arith.constant 0 : index
    %104 = vector.load %arg6[%c0_45, %c3, %c0_46, %c0_47] : memref<1x4x8x8xf32, #tpu.memory_space<vmem>>, vector<1x1x8x8xf32>
    %105 = vector.shape_cast %104 : vector<1x1x8x8xf32> to vector<8x8xf32>
    %106 = vector.shape_cast %103 : vector<8x8xf32> to vector<1x1x8x8xf32>
    tpu.vector_store %arg6[%c0_45, %c3, %c0_46, %c0_47], %106 {strides = array<i32>} : memref<1x4x8x8xf32, #tpu.memory_space<vmem>>, vector<1x1x8x8xf32>,
    %cst_48 = arith.constant dense<0.000000e+00> : vector<8x8xf32>
    %107 = tpu.matmul %103, %88, %cst_48 {dimension_numbers = #tpu.dot_dimension_numbers<[1], [0], [0], [1], [0, 0, 1, 1], [], []>} : vector<8x8xf32>, vector<8x8xf32>, vector<8x8xf32> -> vector<8x8xf32>
    %c24 = arith.constant 24 : index
    %c0_49 = arith.constant 0 : index
    %108 = vector.load %arg3[%c24, %c0_49] : memref<32x32xf32, #tpu.memory_space<vmem>>, vector<8x32xf32>
    %cst_50 = arith.constant dense<0.000000e+00> : vector<8x32xf32>
    %109 = tpu.matmul %107, %108, %cst_50 {dimension_numbers = #tpu.dot_dimension_numbers<[1], [0], [0], [1], [0, 0, 1, 1], [], []>} : vector<8x8xf32>, vector<8x32xf32>, vector<8x32xf32> -> vector<8x32xf32>
    %110 = arith.addf %85, %109 : vector<8x32xf32>
    %c0_51 = arith.constant 0 : index
    %c0_52 = arith.constant 0 : index
    %111 = vector.load %arg4[%c0_51, %c0_52] : memref<1x32xf32, #tpu.memory_space<vmem>>, vector<1x32xf32>
    %112 = vector.broadcast %111 : vector<1x32xf32> to vector<8x32xf32>
    %113 = arith.addf %110, %112 : vector<8x32xf32>
    %c0_53 = arith.constant 0 : index
    %c0_54 = arith.constant 0 : index
    %c0_55 = arith.constant 0 : index
    %114 = vector.load %arg5[%c0_53, %c0_54, %c0_55] : memref<1x8x32xf32, #tpu.memory_space<vmem>>, vector<1x8x32xf32>
    %115 = vector.shape_cast %114 : vector<1x8x32xf32> to vector<8x32xf32>
    %116 = vector.shape_cast %113 : vector<8x32xf32> to vector<1x8x32xf32>
    tpu.vector_store %arg5[%c0_53, %c0_54, %c0_55], %116 {strides = array<i32>} : memref<1x8x32xf32, #tpu.memory_space<vmem>>, vector<1x8x32xf32>,
    return
  }
  func.func @transform_0(%arg0: i32) -> (i32, i32, i32) {
    %c0_i32 = arith.constant 0 : i32
    %c0_i32_0 = arith.constant 0 : i32
    %c0_i32_1 = arith.constant 0 : i32
    return %arg0, %c0_i32, %c0_i32_0 : i32, i32, i32
  }
  func.func @transform_1(%arg0: i32) -> (i32, i32) {
    %c0_i32 = arith.constant 0 : i32
    %c0_i32_0 = arith.constant 0 : i32
    %c0_i32_1 = arith.constant 0 : i32
    return %c0_i32, %c0_i32_0 : i32, i32
  }
  func.func @transform_2(%arg0: i32) -> (i32, i32) {
    %c0_i32 = arith.constant 0 : i32
    %c0_i32_0 = arith.constant 0 : i32
    %c0_i32_1 = arith.constant 0 : i32
    return %c0_i32, %c0_i32_0 : i32, i32
  }
  func.func @transform_3(%arg0: i32) -> (i32, i32) {
    %c0_i32 = arith.constant 0 : i32
    %c0_i32_0 = arith.constant 0 : i32
    %c0_i32_1 = arith.constant 0 : i32
    return %c0_i32, %c0_i32_0 : i32, i32
  }
  func.func @transform_4(%arg0: i32) -> (i32, i32, i32) {
    %c0_i32 = arith.constant 0 : i32
    %c0_i32_0 = arith.constant 0 : i32
    %c0_i32_1 = arith.constant 0 : i32
    return %arg0, %c0_i32, %c0_i32_0 : i32, i32, i32
  }
  func.func @transform_5(%arg0: i32) -> (i32, i32, i32, i32) {
    %c0_i32 = arith.constant 0 : i32
    %c0_i32_0 = arith.constant 0 : i32
    %c0_i32_1 = arith.constant 0 : i32
    %c0_i32_2 = arith.constant 0 : i32
    return %arg0, %c0_i32, %c0_i32_0, %c0_i32_1 : i32, i32, i32, i32
  }
}

</mosaic_0001>

<bundles_post_ra>
// kernel: tpu_custom_call.1
= control target key start
LH: loop header
LB: loop body
LE: loop exit
PB: predicated region body
PF: predicated region fallthrough
CT: control target
= control target key end

     0   :  { %11 = vsyncpa [#allocation3], 0  ;;  %s2378_s0 = inlined_call_operand.hbm [shape: f32[2,8,32], index: 0, kind: input, shape index: {}]   ;;  %s2379_s1 = inlined_call_operand.hbm [shape: f32[32,96], index: 1, kind: input, shape index: {}]   ;;  %s2380_s2 = inlined_call_operand.hbm [shape: f32[32,32], index: 2, kind: input, shape index: {}]   ;;  %s2381_s3 = inlined_call_operand.vmem [shape: f32[1,32], index: 3, kind: input, shape index: {}]   ;;  %s2382_s4 = inlined_call_operand.hbm [shape: f32[2,8,32], index: 4, kind: output, shape index: {0}]   ;;  %s2383_s5 = inlined_call_operand.hbm [shape: f32[2,4,8,8], index: 5, kind: output, shape index: {1}]  }
   0x1   :  { %13 = vsyncpa [#allocation3 + $0x1], 0 }
   0x2   :  { %14 = vsyncpa [#allocation6], 0 }
   0x3   :  { %15 = vsyncpa [#allocation4], 0 }
   0x4   :  { %17 = vsyncpa [#allocation4 + $0x1], 0 }
   0x5   :  { %18 = vsyncpa [#allocation10], 0 }
   0x6   :  { %20 = vsyncpa [#allocation10 + $0x1], 0  ;;  %s1999_s18 = smov 0   ;;  %s2001_s19 = smov 0  }
   0x7   :  { %s2003_s20 = smov 0   ;;  %s2005_s21 = smov 0  }
   0x8 LB: > { %s2020_s22 = sadd.s32 4294967295, %s1944_s21   ;;  %s1502_s23 = sadd.s32 4294967294, %s1944_s21   ;;  %s1944_s21 = sphi %s2005_s21, %s2403_s21   ;;  %s1940_s20 = sphi %s2003_s20, %s2402_s20   ;;  %s1936_s19 = sphi %s2001_s19, %s2401_s19   ;;  %s1932_s18 = sphi %s1999_s18, %s2400_s18  }
   0x9   : > { %p46_p0 = scmp.ne.s32.totalorder %s1936_s19, %s1932_s18  ;;  %p2384_p1 = scmp.eq.s32.totalorder %s2020_s22, 0 }
   0xa   : > { %p139_p3 = scmp.eq.s32.totalorder %s1502_s23, 1  ;;  %p1503_p5 = scmp.ge.s32.totalorder %s1944_s21, 1 }
   0xb   : > { %p2029_p4 = por %p2384_p1, %p46_p0  ;;  %p172_p7 = scmp.lt.s32.totalorder %s1944_s21, 3 }
   0xc   : > { %p2034_p6 = por %p139_p3, %p46_p0  ;;  %s1946_s27 = smov [#allocation5]  }
   0xd   : > { %s2387_s24 = scalar_select %p2029_p4, 1, 0 }
   0xe   : > { %s2388_s25 = scalar_select %p2034_p6, 1, 0 }
   0xf   : > { %p2039_p8 = pnand %p1503_p5, %p172_p7  ;;  %s184_s28 = sshll.u32 %s1946_s27, 4  ;;  %s2043_s28 = int_to_ptr.vmem [resolvable:$true] %s184_s28 }
  0x10   : > { %s1947_s30 = smov [#allocation7]   ;;  %s1756_s9 = scalar_lea.hbm %s2379_s1, 512 }
  0x11   : > { %p1664_p9 = pneg %p2039_p8  ;;  %s197_s6 = sshll.u32 %s1947_s30, 4  ;;  %s2054_s6 = int_to_ptr.vmem [resolvable:$true] %s197_s6 }
  0x12   : > { %p1757_p12 = scmp.ne.s32.totalorder %s2379_s1, %s1756_s9  ;;  %p1763_p5 = scmp.lt.u32.totalorder %s1756_s9, %s2379_s1 }
  0x13   : > { %p2050_p11 = pnand %p1664_p9, %p2384_p1 }
  0x15   : > { %p1758_p13 = pneg %p2050_p11 }
  0x17   : > { %p1759_p0 = pnand %p1758_p13, %p1757_p12 }
  0x19   : > { %p1760_p3 = pneg %p1759_p0 }
  0x1b   : > { %p1765_p7 = pnand %p1763_p5, %p1760_p3 }
  0x1d   : > { %1768 = shalt.err (!%p1765_p7)
}
  0x1e   : > { %s1769_s14 = scalar_lea.vmem %s2043_s28, 512  ;;  %p1777_p2 = scmp.lt.s32.totalorder %s2043_s28, %s2043_s28 }
  0x1f   : > { %p1770_p9 = scmp.ne.s32.totalorder %s2043_s28, %s1769_s14  ;;  %p1778_p12 = scmp.lt.s32.totalorder %s1769_s14, %s1769_s14 }
  0x21   : > { %p1772_p10 = pnand %p1770_p9, %p1758_p13  ;;  %p1779_p0 = por %p1778_p12, %p1777_p2 }
  0x23   : > { %p1773_p1 = pneg %p1772_p10 }
  0x25   : > { %p1780_p6 = pnand %p1779_p0, %p1773_p1 }
  0x27   : > { %1783 = shalt.err (!%p1780_p6)
}
  0x28   : > { %s1948_s15 = smov 128   ;;  %s1949_s16 = smov 8  }
  0x29   : > { %1667 = dma.hbm_to_vmem [thread:$0]  (!%p2050_p11), %s2379_s1, 512, %s2043_s28, [#allocation6], %s1948_s15, %s1948_s15, %s1949_s16  }
  0x2a   : > { %s1784_s7 = scalar_lea.hbm %s2380_s2, 512 }
  0x2b   : > { %p1785_p2 = scmp.ne.s32.totalorder %s2380_s2, %s1784_s7  ;;  %p1791_p10 = scmp.lt.u32.totalorder %s1784_s7, %s2380_s2 }
  0x2d   : > { %p1787_p1 = pnand %p1785_p2, %p1758_p13 }
  0x2f   : > { %p1788_p6 = pneg %p1787_p1 }
  0x31   : > { %p1793_p3 = pnand %p1791_p10, %p1788_p6 }
  0x33   : > { %1796 = shalt.err (!%p1793_p3)
}
  0x34   : > { %s1797_s28 = scalar_lea.vmem %s2054_s6, 512  ;;  %p1805_p12 = scmp.lt.s32.totalorder %s2054_s6, %s2054_s6 }
  0x35   : > { %p1798_p5 = scmp.ne.s32.totalorder %s2054_s6, %s1797_s28  ;;  %p1806_p0 = scmp.lt.s32.totalorder %s1797_s28, %s1797_s28 }
  0x37   : > { %p1800_p7 = pnand %p1798_p5, %p1758_p13  ;;  %p1807_p2 = por %p1806_p0, %p1805_p12 }
  0x39   : > { %p1801_p9 = pneg %p1800_p7 }
  0x3b   : > { %p1808_p1 = pnand %p1807_p2, %p1801_p9 }
  0x3d   : > { %1811 = shalt.err (!%p1808_p1)
}
  0x3e   : > { %1670 = dma.hbm_to_vmem [thread:$0]  (!%p2050_p11), %s2380_s2, 512, %s2054_s6, [#allocation6], %s1948_s15, %s1948_s15, %s1949_s16  }
  0x3f   : > { %s2109_s14 = sadd.s32 1, %s1944_s21   ;;  %s33_s29 = sadd.s32 1, %s1940_s20 }
  0x40   : > { %s30_s17 = ssub.s32 %s1944_s21, %s2109_s14  ;;  %p40_p13 = scmp.ne.s32.totalorder %s1940_s20, %s1936_s19 }
  0x41   : > { %p31_p6 = scmp.eq.s32.totalorder %s30_s17, 0  ;;  %p41_p10 = scmp.eq.s32.totalorder %s1944_s21, 0 }
  0x42   : > { %p2391_p3 = scmp.eq.s32.totalorder %s2020_s22, 1  ;;  %p1684_p7 = scmp.lt.s32.totalorder %s1944_s21, 2 }
  0x43   : > { %s2125_s27 = scalar_select %p31_p6, %s1940_s20, %s33_s29  }
  0x44   : > { %p2119_p5 = por %p2391_p3, %p40_p13  ;;  %p42_p9 = por %p41_p10, %p40_p13 }
  0x45   : > { %s214_s30 = sand.u32 1, %s1940_s20   ;;  %s1508_s6 = sshll.u32 %s1944_s21, 7 }
  0x46   : > { %s2392_s23 = scalar_select %p2119_p5, 1, 0 }
  0x47   : > { %s1507_s7 = sshll.u32 %s214_s30, 3  ;;  %s2132_s8 = scalar_lea.hbm %s2378_s0, %s1508_s6 }
  0x48   : > { %s218_s9 = scalar_lea.vmem [#allocation2], %s1507_s7  ;;  %p2136_p11 = pnand %p1684_p7, %p42_p9 }
  0x49   : > { %s225_s10 = sshll.u32 %s218_s9, 4  ;;  %s215_s28 = scalar_lea.sflag [#allocation3], %s214_s30  ;;  %s2134_s10 = int_to_ptr.vmem [resolvable:$true] %s225_s10 }
  0x4a   : > { %s1812_s12 = scalar_lea.hbm %s2132_s8, 128  ;;  %p1814_p0 = pneg %p2136_p11 }
  0x4b   : > { %p1813_p12 = scmp.ne.s32.totalorder %s2132_s8, %s1812_s12  ;;  %s1817_s17 = scalar_lea.hbm %s2378_s0, 256 }
  0x4c   : > { %p1818_p13 = scmp.lt.u32.totalorder %s2132_s8, %s2378_s0  ;;  %p1819_p6 = scmp.lt.u32.totalorder %s1817_s17, %s1812_s12 }
  0x4d   : > { %p1815_p2 = pnand %p1814_p0, %p1813_p12  ;;  %p1821_p3 = scmp.lt.u32.totalorder %s1812_s12, %s2132_s8 }
  0x4e   : > { %p1820_p10 = por %p1819_p6, %p1818_p13 }
  0x4f   : > { %p1816_p1 = pneg %p1815_p2 }
  0x50   : > { %p1822_p7 = por %p1821_p3, %p1820_p10 }
  0x52   : > { %p1823_p9 = pnand %p1822_p7, %p1816_p1 }
  0x54   : > { %1826 = shalt.err (!%p1823_p9)
}
  0x55   : > { %s1827_s30 = scalar_lea.vmem %s2134_s10, 128  ;;  %s1950_s15 = smov [#allocation2]  }
  0x56   : > { %p1828_p12 = scmp.ne.s32.totalorder %s2134_s10, %s1827_s30  ;;  %s1832_s16 = sshll.u32 %s1950_s15, 4  ;;  %s1833_s16 = int_to_ptr.vmem [resolvable:$false] %s1832_s16 }
  0x57   : > { %s1834_s9 = scalar_lea.vmem %s1833_s16, 256  ;;  %p1835_p4 = scmp.lt.s32.totalorder %s2134_s10, %s1833_s16 }
  0x58   : > { %p1830_p2 = pnand %p1828_p12, %p1814_p0  ;;  %p1836_p13 = scmp.lt.s32.totalorder %s1834_s9, %s1827_s30 }
  0x5a   : > { %p1831_p5 = pneg %p1830_p2  ;;  %p1837_p6 = por %p1836_p13, %p1835_p4 }
  0x5c   : > { %p1838_p10 = pnand %p1837_p6, %p1831_p5 }
  0x5e   : > { %1841 = shalt.err (!%p1838_p10)
}
  0x5f   : > { %1674 = dma.hbm_to_vmem [thread:$0]  (!%p2136_p11), %s2132_s8, 128, %s2134_s10, %s215_s28  }
  0x60   : > { %234 = sbr.rel (%p2039_p8) target bundleno = 2700 (0xa8c), region = 36  ;;  %s2168_s12 = sand.u32 (!%p2039_p8), 1, %s1936_s19  }
  0x61   : > { %s1510_s13 = sshll.u32 (!%p2039_p8), %s2168_s12, 3  ;;  %s237_s29 = scalar_lea.sflag (!%p2039_p8), [#allocation3], %s2168_s12 }
  0x62   : > { %s240_s17 = scalar_lea.vmem (!%p2039_p8), [#allocation2], %s1510_s13  ;;  %p2394_p4 = scmp.ne.s32.totalorder (!%p2039_p8), %s2387_s24, 0 }
  0x67   : > { %1915 = dma.done.wait (%p2394_p4), %s237_s29, 128  }
  0x68   : > { %1917 = vsyncadd (%p2394_p4), %s237_s29, 4294967168  ;;  %p2395_p5 = scmp.eq.s32.totalorder %s2020_s22, 0 }
  0x6a   : > { %1919 = dma.done.wait (%p2395_p5), [#allocation6], 1024   ;;  %p2396_p8 = pmov %p2395_p5 }
  0x6b   : > { %v1951_v0 = vmov 0.0|0.0   ;;  %vm1952_vm0 = vmmov 0   ;;  %v1953_v1 = vmov 0.0   ;;  %v281_v2 = vld [vmem:[#allocation5] sm:$0xff]  ;;  %v282_v3 = vld [vmem:[#allocation5 + $0x8] sm:$0xff]  ;;  %v283_v4 = vld [vmem:[#allocation5 + $0x10] sm:$0xff]  ;;  %v359_v14 = vlaneseq }
  0x6c   : > { %1921 = vsyncadd (%p2396_p8), [#allocation6], 4294966272  ;;  %1644 = vmatprep.subr.bf16.mxu0 %v1951_v0  ;;  %1581 = vmatprep.mubr.msk.f32.mxu0 %vm1952_vm0, %v1953_v1  ;;  %v1645_v5 = vpack.c.bf16 %v282_v3, %v281_v2  ;;  %v284_v6 = vld [vmem:[#allocation5 + $0x18] sm:$0xff]  ;;  %vm285_vm1 = vcmask 261120   ;;  %s1954_s24 = smov 120   ;;  %s1955_s26 = smov 96  }
  0x6d   : > { %1584 = vmatprep.subr.mxu1 %v1953_v1  ;;  %1586 = vmatprep.mubr.msk.f32.mxu1 %vm1952_vm0, %v1953_v1  ;;  %v1648_v7 = vpack.c.bf16 %v284_v6, %v283_v4  ;;  %v280_v8 = vld [vmem:[%s240_s17] sm:$0xff]  ;;  %s1956_s8 = smov 88   ;;  %vm367_vm2 = vcmask 64512   ;;  %v2207_v15 = vshrl.u32 %v359_v14, 7  ;;  %v2209_v16 = vand.u32 127, %v359_v14  ;;  %s1957_s10 = smov 56  }
  0x6e   : > { %1646 = vmatpush3.bf16.msra.mxu0 %v1645_v5  ;;  %s1958_s11 = smov 64   ;;  %s1959_s28 = smov 80   ;;  %v702_v37 = vld [vmem:[#allocation7 + $0x8] sm:$0xff]  ;;  %v532_v46 = vld [vmem:[#allocation7] sm:$0xff] }
  0x6f   : > { %1647 = vmatprep.subr.bf16.mxu0 %v1951_v0  ;;  %vm363_vm3 = vcmp.ge.s32.totalorder %v2207_v15, %v2209_v16  ;;  %s1960_s7 = smov 112   ;;  %s1514_s6 = sshll.u32 %s2168_s12, 5  ;;  %v1262_v15 = vld [vmem:[#allocation7 + $0x18] sm:$0xff] }
  0x70   : > { %s2230_s30 = scalar_lea.vmem [#allocation9], %s1514_s6  ;;  %s1961_s15 = smov 72  }
  0x71   : > { %s1962_s16 = smov 104   ;;  %s1963_s9 = smov 48  }
  0x72   : > { %1649 = vmatpush3.bf16.msra.mxu0 %v1648_v7  ;;  %s1964_s29 = smov 40   ;;  %s1543_s17 = sshll.u32 %s2020_s22, 9 }
  0x73   : > { %1594 = vmatprep.subr.mxu0 %v1953_v1  ;;  %p2397_p0 = scmp.ne.s32.totalorder %s2392_s23, 0 }
  0x75   : > { %1582 = vmatmul.mubr.msk.f32.vlgmr.msra.gmra.mrb[0].mxu0 %vm285_vm1, %v280_v8 }
  0x76   : > { %1596 = vmatprep.mubr.msk.f32.mxu0 %vm1952_vm0, %v1953_v1 }
 0x148   : > { %v2191_v9 = vpop.f32.mrb[0].mxu0 }
 0x149   : > { %533 = vrot.lane.b32.xlu1 %v2191_v9, %s1954_s24  ;;  %365 = vrot.lane.b32.xlu0 %v2191_v9, %s1955_s26  ;;  %v1583_v10 = vpop.f32.mrb[1].mxu0  ;;  %s1378_s24 = sshll.u32 %s2230_s30, 4  ;;  %s2298_s24 = int_to_ptr.vmem [resolvable:$true] %s1378_s24 }
 0x14d   : > { %535 = vrot.lane.b32.xlu0 %v2191_v9, %s1956_s8 }
 0x1bb   : > { %v366_v11 = vpop.permute.xlu0 %365  ;;  %v534_v13 = vpop.permute.xlu1 %533 }
 0x1bc   : > { %1585 = vmatpush3.xpose.msk.msra.mxu1 %vm367_vm2, %v366_v11 }
 0x1bd   : > { %1589 = vmatprep.subr.mxu1 %v1953_v1 }
 0x1bf   : > { %1587 = vmatmul.mubr.msk.f32.vlgmr.msra.gmra.mrb[0].mxu1 %vm367_vm2, %v2191_v9  ;;  %v536_v12 = vpop.permute.xlu0 %535 }
 0x1c0   : > { %1595 = vmatpush3.xpose.msk.msra.mxu0 %vm367_vm2, %v536_v12  ;;  %1591 = vmatprep.mubr.msk.f32.mxu1 %vm1952_vm0, %v1953_v1  ;;  %v1018_v12 = vld [vmem:[#allocation7 + $0x10] sm:$0xff] }
 0x1c1   : > { %1604 = vmatprep.subr.mxu0 %v1953_v1 }
 0x1c3   : > { %1597 = vmatmul.mubr.msk.f32.vlgmr.msra.gmra.mrb[2].mxu0 %vm367_vm2, %v534_v13 }
 0x1c4   : > { %1606 = vmatprep.mubr.msk.f32.mxu0 %vm1952_vm0, %v1953_v1  ;;  %1605 = vmatpush3.msra.mxu0 %v702_v37 }
 0x1c5   : > { %1614 = vmatprep.subr.mxu0 %v1953_v1 }
 0x292   : > { %v438_v17 = vpop.f32.mrb[0].mxu1 }
 0x293   : > { %v442_v18 = vmul.f32 0.35355338, %v438_v17  ;;  %v1588_v19 = vpop.f32.mrb[1].mxu1 }
 0x295   : > { %v443_v20 = vsel %vm363_vm3, %v442_v18, -inf }
 0x296   : > { %v607_v21 = vpop.f32.mrb[2].mxu0  ;;  %v444_v22 = vsel %vm367_vm2, %v443_v20, -inf }
 0x297   : > { %v611_v23 = vmul.f32 0.35355338, %v607_v21  ;;  %445 = vmax.xlane.f32.xlu1 %v444_v22  ;;  %v1598_v24 = vpop.f32.mrb[3].mxu0 }
 0x299   : > { %v612_v25 = vsel %vm363_vm3, %v611_v23, -inf }
 0x29a   : > { %v613_v26 = vsel %vm367_vm2, %v612_v25, -inf }
 0x29b   : > { %614 = vmax.xlane.f32.xlu0 %v613_v26 }
 0x324   : > { %v446_v27 = vpop.xlane.xlu1 %445 }
 0x325   : > { %v447_v28 = vsub.f32 %v443_v20, %v446_v27 }
 0x327   : > { %v448_v29 = vmul.f32 1.442695, %v447_v28 }
 0x328   : > { %v615_v30 = vpop.xlane.xlu0 %614 }
 0x329   : > { %1740 = vpow2.f32 %v448_v29  ;;  %v616_v31 = vsub.f32 %v612_v25, %v615_v30 }
 0x32b   : > { %v617_v32 = vmul.f32 1.442695, %v616_v31 }
 0x32d   : > { %1742 = vpow2.f32 %v617_v32 }
 0x333   : > { %v1741_v33 = vpop.eup %1740 }
 0x334   : > { %v450_v34 = vsel %vm367_vm2, %v1741_v33, 0.0 }
 0x335   : > { %451 = vadd.xlane.f32.xlu0 %v450_v34 }
 0x337   : > { %v1743_v35 = vpop.eup %1742 }
 0x338   : > { %v619_v36 = vsel %vm367_vm2, %v1743_v35, 0.0 }
 0x339   : > { %620 = vadd.xlane.f32.xlu1 %v619_v36 }
 0x34a   : > { %626 = vrot.lane.b32.xlu1 %v2191_v9, %s1957_s10  ;;  %s2296_s10 = scalar_lea.hbm %s2383_s5, %s1543_s17 }
 0x34b   : > { %456 = vrot.lane.b32.xlu0 %v2191_v9, %s1958_s11  ;;  %s1352_s11 = scalar_lea.sflag [#allocation10], %s2168_s12 }
 0x34e   : > { %851 = vrot.lane.b32.xlu1 %v2191_v9, %s1959_s28  ;;  %s1842_s28 = scalar_lea.vmem %s2298_s24, 512 }
 0x34f   : > { %849 = vrot.lane.b32.xlu0 %v2191_v9, %s1960_s7  ;;  %p1843_p11 = scmp.ne.s32.totalorder %s2298_s24, %s1842_s28  ;;  %s1965_s7 = smov [#allocation9]  }
 0x350   : > { %s1846_s6 = sshll.u32 %s1965_s7, 4  ;;  %s1847_s6 = int_to_ptr.vmem [resolvable:$false] %s1846_s6 }
 0x351   : > { %p1844_p1 = pnand %p1843_p11, %p2397_p0  ;;  %p1849_p7 = scmp.lt.s32.totalorder %s2298_s24, %s1847_s6 }
 0x353   : > { %p1845_p3 = pneg %p1844_p1 }
 0x3c2   : > { %v452_v38 = vpop.xlane.xlu0 %451 }
 0x3c3   : > { %1744 = vrcp.f32 %v452_v38 }
 0x3c6   : > { %v621_v39 = vpop.xlane.xlu1 %620  ;;  %v457_v40 = vpop.permute.xlu0 %456 }
 0x3c7   : > { %1746 = vrcp.f32 %v621_v39  ;;  %1590 = vmatpush3.msra.mxu1 %v457_v40 }
 0x3c8   : > { %1599 = vmatprep.subr.mxu1 %v1953_v1 }
 0x3ca   : > { %v627_v43 = vpop.permute.xlu1 %626  ;;  %v850_v52 = vpop.permute.xlu0 %849 }
 0x3cd   : > { %v1745_v41 = vpop.eup %1744 }
 0x3ce   : > { %v454_v42 = vmul.f32 %v1745_v41, %v1741_v33  ;;  %v852_v50 = vpop.permute.xlu1 %851 }
 0x3d0   : > { %455 = vst.msk [vmem:[%s2230_s30] sm:$0xff] %vm367_vm2, %v454_v42  ;;  %1592 = vmatmul.mubr.msk.f32.vlgmr.msra.gmra.mrb[2].mxu1 %vm367_vm2, %v454_v42 }
 0x3d1   : > { %v1747_v44 = vpop.eup %1746  ;;  %1600 = vmatpush3.msra.mxu1 %v627_v43  ;;  %1601 = vmatprep.mubr.msk.f32.mxu1 %vm1952_vm0, %v1953_v1 }
 0x3d2   : > { %v623_v45 = vmul.f32 %v1747_v44, %v1743_v35  ;;  %1609 = vmatprep.subr.mxu1 %v1953_v1 }
 0x3d4   : > { %1521 = vst.msk [vmem:[%s2230_s30 + $0x8] sm:$0xff] %vm367_vm2, %v623_v45  ;;  %1602 = vmatmul.mubr.msk.f32.vlgmr.msra.gmra.mrb[4].mxu1 %vm367_vm2, %v623_v45 }
 0x3d5   : > { %1611 = vmatprep.mubr.msk.f32.mxu1 %vm1952_vm0, %v1953_v1  ;;  %1610 = vmatpush3.msra.mxu1 %v532_v46 }
 0x3d6   : > { %1619 = vmatprep.subr.mxu1 %v1953_v1 }
 0x4a3   : > { %v528_v47 = vpop.f32.mrb[2].mxu1 }
 0x4a4   : > { %v1593_v48 = vpop.f32.mrb[3].mxu1  ;;  %1612 = vmatmul.mubr.msk.f32.vlgmr.msra.gmra.mrb[6].mxu1 %vm367_vm2, %v528_v47 }
 0x4a5   : > { %1621 = vmatprep.mubr.msk.f32.mxu1 %vm1952_vm0, %v1953_v1 }
 0x4a7   : > { %v698_v49 = vpop.f32.mrb[4].mxu1 }
 0x4a8   : > { %v1603_v51 = vpop.f32.mrb[5].mxu1  ;;  %1607 = vmatmul.mubr.msk.f32.vlgmr.msra.gmra.mrb[4].mxu0 %vm367_vm2, %v698_v49 }
 0x4a9   : > { %1615 = vmatpush3.xpose.msk.msra.mxu0 %vm367_vm2, %v852_v50  ;;  %1616 = vmatprep.mubr.msk.f32.mxu0 %vm1952_vm0, %v1953_v1 }
 0x4aa   : > { %1624 = vmatprep.subr.mxu0 %v1953_v1 }
 0x4ac   : > { %1617 = vmatmul.mubr.msk.f32.vlgmr.msra.gmra.mrb[6].mxu0 %vm367_vm2, %v850_v52 }
 0x4ad   : > { %1626 = vmatprep.mubr.msk.f32.mxu0 %vm1952_vm0, %v1953_v1  ;;  %1625 = vmatpush3.msra.mxu0 %v1018_v12 }
 0x4ae   : > { %1634 = vmatprep.subr.mxu0 %v1953_v1 }
 0x577   : > { %v845_v53 = vpop.f32.mrb[6].mxu1 }
 0x578   : > { %v1613_v54 = vpop.f32.mrb[7].mxu1 }
 0x57b   : > { %v772_v55 = vpop.f32.mrb[4].mxu0 }
 0x57c   : > { %v2255_v56 = vadd.f32 %v845_v53, %v772_v55  ;;  %v1608_v57 = vpop.f32.mrb[5].mxu0 }
 0x57f   : > { %v923_v58 = vpop.f32.mrb[6].mxu0 }
 0x580   : > { %v927_v59 = vmul.f32 0.35355338, %v923_v58  ;;  %v1618_v60 = vpop.f32.mrb[7].mxu0 }
 0x582   : > { %v928_v61 = vsel %vm363_vm3, %v927_v59, -inf }
 0x583   : > { %v929_v62 = vsel %vm367_vm2, %v928_v61, -inf }
 0x584   : > { %930 = vmax.xlane.f32.xlu1 %v929_v62 }
 0x595   : > { %1095 = vrot.lane.b32.xlu1 %v2191_v9, %s1961_s15 }
 0x599   : > { %1093 = vrot.lane.b32.xlu1 %v2191_v9, %s1962_s16 }
 0x611   : > { %v931_v63 = vpop.xlane.xlu1 %930 }
 0x612   : > { %v932_v0 = vsub.f32 %v928_v61, %v931_v63 }
 0x614   : > { %v933_v2 = vmul.f32 1.442695, %v932_v0 }
 0x615   : > { %v1096_v8 = vpop.permute.xlu1 %1095 }
 0x616   : > { %1748 = vpow2.f32 %v933_v2 }
 0x619   : > { %v1094_v11 = vpop.permute.xlu1 %1093 }
 0x620   : > { %v1749_v3 = vpop.eup %1748 }
 0x621   : > { %v935_v4 = vsel %vm367_vm2, %v1749_v3, 0.0 }
 0x622   : > { %936 = vadd.xlane.f32.xlu0 %v935_v4 }
 0x638   : > { %942 = vrot.lane.b32.xlu0 %v2191_v9, %s1963_s9 }
 0x6af   : > { %v937_v5 = vpop.xlane.xlu0 %936 }
 0x6b0   : > { %1750 = vrcp.f32 %v937_v5 }
 0x6b3   : > { %v943_v6 = vpop.permute.xlu0 %942 }
 0x6b4   : > { %1620 = vmatpush3.msra.mxu1 %v943_v6 }
 0x6b5   : > { %1629 = vmatprep.subr.mxu1 %v1953_v1 }
 0x6ba   : > { %v1751_v7 = vpop.eup %1750 }
 0x6bb   : > { %v939_v10 = vmul.f32 %v1751_v7, %v1749_v3 }
 0x6bd   : > { %1527 = vst.msk [vmem:[%s2230_s30 + $0x10] sm:$0xff] %vm367_vm2, %v939_v10  ;;  %1622 = vmatmul.mubr.msk.f32.vlgmr.msra.gmra.mrb[8].mxu1 %vm367_vm2, %v939_v10 }
 0x6be   : > { %1630 = vmatpush3.xpose.msk.msra.mxu1 %vm367_vm2, %v1096_v8  ;;  %1631 = vmatprep.mubr.msk.f32.mxu1 %vm1952_vm0, %v1953_v1 }
 0x6bf   : > { %1639 = vmatprep.subr.mxu1 %v1953_v1 }
 0x6c1   : > { %1632 = vmatmul.mubr.msk.f32.vlgmr.msra.gmra.mrb[10].mxu1 %vm367_vm2, %v1094_v11 }
 0x6c2   : > { %1641 = vmatprep.mubr.msk.f32.mxu1 %vm1952_vm0, %v1953_v1  ;;  %1640 = vmatpush3.msra.mxu1 %v1262_v15 }
 0x790   : > { %v1014_v13 = vpop.f32.mrb[8].mxu1 }
 0x791   : > { %v1623_v14 = vpop.f32.mrb[9].mxu1  ;;  %1627 = vmatmul.mubr.msk.f32.vlgmr.msra.gmra.mrb[8].mxu0 %vm367_vm2, %v1014_v13 }
 0x792   : > { %1636 = vmatprep.mubr.msk.f32.mxu0 %vm1952_vm0, %v1953_v1 }
 0x794   : > { %v1167_v17 = vpop.f32.mrb[10].mxu1 }
 0x795   : > { %v1171_v18 = vmul.f32 0.35355338, %v1167_v17  ;;  %v1633_v19 = vpop.f32.mrb[11].mxu1 }
 0x797   : > { %v1172_v20 = vsel %vm363_vm3, %v1171_v18, -inf }
 0x798   : > { %v1173_v21 = vsel %vm367_vm2, %v1172_v20, -inf }
 0x799   : > { %1174 = vmax.xlane.f32.xlu0 %v1173_v21 }
 0x7af   : > { %1186 = vrot.lane.b32.xlu0 %v2191_v9, %s1964_s29 }
 0x826   : > { %v1175_v22 = vpop.xlane.xlu0 %1174 }
 0x827   : > { %v1176_v23 = vsub.f32 %v1172_v20, %v1175_v22 }
 0x829   : > { %v1177_v24 = vmul.f32 1.442695, %v1176_v23 }
 0x82a   : > { %v1187_v25 = vpop.permute.xlu0 %1186 }
 0x82b   : > { %1752 = vpow2.f32 %v1177_v24  ;;  %1635 = vmatpush3.msra.mxu0 %v1187_v25 }
 0x835   : > { %v1753_v1 = vpop.eup %1752 }
 0x836   : > { %v1179_v26 = vsel %vm367_vm2, %v1753_v1, 0.0 }
 0x837   : > { %1180 = vadd.xlane.f32.xlu1 %v1179_v26 }
 0x864   : > { %v1088_v16 = vpop.f32.mrb[8].mxu0 }
 0x865   : > { %v1092_v27 = vadd.f32 %v1088_v16, %v2255_v56  ;;  %v1628_v9 = vpop.f32.mrb[9].mxu0 }
 0x8c4   : > { %v1181_v28 = vpop.xlane.xlu1 %1180 }
 0x8c5   : > { %1754 = vrcp.f32 %v1181_v28 }
 0x8cf   : > { %v1755_v29 = vpop.eup %1754 }
 0x8d0   : > { %v1183_v30 = vmul.f32 %v1755_v29, %v1753_v1 }
 0x8d2   : > { %1532 = vst.msk [vmem:[%s2230_s30 + $0x18] sm:$0xff] %vm367_vm2, %v1183_v30  ;;  %1637 = vmatmul.mubr.msk.f32.vlgmr.msra.gmra.mrb[10].mxu0 %vm367_vm2, %v1183_v30  ;;  %s1848_s30 = scalar_lea.vmem %s1847_s6, 1024 }
 0x8d3   : > { %p1850_p9 = scmp.lt.s32.totalorder %s1848_s30, %s1842_s28 }
 0x8d5   : > { %p1851_p12 = por %p1850_p9, %p1849_p7 }
 0x8d7   : > { %p1852_p2 = pnand %p1851_p12, %p1845_p3 }
 0x9a5   : > { %v1258_v31 = vpop.f32.mrb[10].mxu0 }
 0x9a6   : > { %v1638_v32 = vpop.f32.mrb[11].mxu0  ;;  %1642 = vmatmul.mubr.msk.f32.vlgmr.msra.gmra.mrb[12].mxu1 %vm367_vm2, %v1258_v31 }
 0x9a7   : > { %1855 = shalt.err (!%p1852_p2)
}
 0x9a8   : > { %s1856_s15 = scalar_lea.hbm %s2296_s10, 512  ;;  %s1860_s29 = scalar_lea.hbm %s2383_s5, 1024 }
 0x9a9   : > { %p1857_p13 = scmp.ne.s32.totalorder %s2296_s10, %s1856_s15  ;;  %p1861_p4 = scmp.lt.u32.totalorder %s2296_s10, %s2383_s5 }
 0x9aa   : > { %p1862_p5 = scmp.lt.u32.totalorder %s1860_s29, %s1856_s15  ;;  %p1864_p11 = scmp.lt.u32.totalorder %s1856_s15, %s2296_s10 }
 0x9ab   : > { %p1858_p6 = pnand %p1857_p13, %p2397_p0 }
 0x9ac   : > { %p1863_p8 = por %p1862_p5, %p1861_p4 }
 0x9ad   : > { %p1859_p10 = pneg %p1858_p6 }
 0x9ae   : > { %p1865_p1 = por %p1864_p11, %p1863_p8 }
 0x9b0   : > { %p1866_p3 = pnand %p1865_p1, %p1859_p10 }
 0x9b2   : > { %1869 = shalt.err (!%p1866_p3)
}
 0x9b3   : > { %s1966_s8 = smov 128   ;;  %s1967_s28 = smov 8   ;;  %v1535_v34 = vld [vmem:[%s2381_s3] ss:$0 sm:$0xff] }
 0x9b4   : > { %1661 = dma.vmem_to_hbm [thread:$0]  (%p2397_p0), %s2298_s24, 512, %s2296_s10, %s1352_s11, %s1966_s8, %s1966_s8, %s1967_s28  }
 0x9b5   : > { %s1538_s30 = sshll.u32 %s2020_s22, 7  ;;  %s272_s15 = scalar_lea.vmem [#allocation8], %s1510_s13 }
 0x9b6   : > { %s1365_s16 = sshll.u32 %s272_s15, 4  ;;  %s2333_s17 = scalar_lea.hbm %s2382_s4, %s1538_s30  ;;  %s2335_s16 = int_to_ptr.vmem [resolvable:$true] %s1365_s16 }
 0x9b7   : > { %s1347_s24 = scalar_lea.sflag [#allocation4], %s2168_s12  ;;  %s1870_s22 = scalar_lea.vmem %s2335_s16, 128 }
 0x9b8   : > { %p1871_p7 = scmp.ne.s32.totalorder %s2335_s16, %s1870_s22  ;;  %s1968_s13 = smov [#allocation8]  }
 0x9b9   : > { %s1874_s10 = sshll.u32 %s1968_s13, 4  ;;  %s1875_s10 = int_to_ptr.vmem [resolvable:$false] %s1874_s10 }
 0x9ba   : > { %p1872_p9 = pnand %p1871_p7, %p2397_p0  ;;  %s1876_s11 = scalar_lea.vmem %s1875_s10, 256 }
 0x9bb   : > { %p1877_p2 = scmp.lt.s32.totalorder %s2335_s16, %s1875_s10  ;;  %p1878_p13 = scmp.lt.s32.totalorder %s1876_s11, %s1870_s22 }
 0x9bc   : > { %p1873_p12 = pneg %p1872_p9 }
 0x9bd   : > { %p1879_p6 = por %p1878_p13, %p1877_p2 }
 0x9bf   : > { %p1880_p10 = pnand %p1879_p6, %p1873_p12 }
 0xa79   : > { %v1332_v33 = vpop.f32.mrb[12].mxu1 }
 0xa7a   : > { %v1336_v35 = vadd.f32 %v1332_v33, %v1092_v27  ;;  %v1643_v36 = vpop.f32.mrb[13].mxu1 }
 0xa7c   : > { %v1344_v37 = vadd.f32 %v1535_v34, %v1336_v35 }
 0xa7e   : > { %1345 = vst.msk [vmem:[%s272_s15] sm:$0xff] %vm285_vm1, %v1344_v37 }
 0xa7f   : > { %1883 = shalt.err (!%p1880_p10)
}
 0xa80   : > { %s1884_s12 = scalar_lea.hbm %s2333_s17, 128  ;;  %s1888_s28 = scalar_lea.hbm %s2382_s4, 256 }
 0xa81   : > { %p1885_p4 = scmp.ne.s32.totalorder %s2333_s17, %s1884_s12  ;;  %p1889_p11 = scmp.lt.u32.totalorder %s2333_s17, %s2382_s4 }
 0xa82   : > { %p1890_p1 = scmp.lt.u32.totalorder %s1888_s28, %s1884_s12  ;;  %p1892_p7 = scmp.lt.u32.totalorder %s1884_s12, %s2333_s17 }
 0xa83   : > { %p1886_p5 = pnand %p1885_p4, %p2397_p0 }
 0xa84   : > { %p1891_p3 = por %p1890_p1, %p1889_p11 }
 0xa85   : > { %p1887_p8 = pneg %p1886_p5 }
 0xa86   : > { %p1893_p9 = por %p1892_p7, %p1891_p3 }
 0xa88   : > { %p1894_p12 = pnand %p1893_p9, %p1887_p8 }
 0xa8a   : > { %1897 = shalt.err (!%p1894_p12)
}
 0xa8b   : > { %1660 = dma.vmem_to_hbm [thread:$0]  (%p2397_p0), %s2335_s16, 128, %s2333_s17, %s1347_s24  }
 0xa8c PF: > { %s1393_s30 = sand.u32 1, %s1932_s18   ;;  %p2398_p2 = scmp.ne.s32.totalorder %s2388_s25, 0 }
 0xa8d   : > { %p2399_p13 = scmp.ge.s32.totalorder %s1944_s21, 2  ;;  %s1394_s15 = scalar_lea.sflag [#allocation4], %s1393_s30 }
 0xa8f   : > { %p1676_p6 = pnand %p2399_p13, %p2398_p2 }
 0xa91   : > { %1923 = dma.done.wait (!%p1676_p6), %s1394_s15, 128  }
 0xa92   : > { %1925 = vsyncadd (!%p1676_p6), %s1394_s15, 4294967168  ;;  %s1403_s9 = scalar_lea.sflag [#allocation10], %s1393_s30 }
 0xa93   : > { %1927 = dma.done.wait (!%p1676_p6), %s1403_s9, 512  }
 0xa94   : > { %1929 = vsyncadd (!%p1676_p6), %s1403_s9, 4294966784  ;;  %p23_p0 = scmp.ge.s32.totalorder %s2109_s14, 4   ;;  %s2400_s18 = smov %s1936_s19 }
 0xa95   : > { %s2401_s19 = smov %s1940_s20  ;;  %s2402_s20 = smov %s2125_s27 }
 0xa96   : > { %s2403_s21 = smov %s2109_s14  ;;  %25 = sbr.rel (!%p23_p0) target bundleno = 8 (0x8), region = 109 }
 0xa9d   :  { %1408 = vsyncpa [#allocation3], 1 }
 0xa9e   :  { %1410 = vsyncpa [#allocation3 + $0x1], 1 }
 0xa9f   :  { %1411 = vsyncpa [#allocation6], 1 }
 0xaa0   :  { %1412 = vsyncpa [#allocation4], 1 }
 0xaa1   :  { %1414 = vsyncpa [#allocation4 + $0x1], 1 }
 0xaa2   :  { %1415 = vsyncpa [#allocation10], 1 }
 0xaa3   :  { %1417 = vsyncpa [#allocation10 + $0x1], 1 }

</bundles_post_ra>
